<compile_context>
chip_gen: v7x
topology: tpu7x:2x2x1
jax: 0.10.0
libtpu: 0.0.40
codegen_flags: <defaults>
</compile_context>

<pallas_src>
import numpy as np
import jax
import jax.numpy as jnp
from jax.experimental import pallas as pl
from jax.experimental.pallas import tpu as pltpu


# ----------------------------------------------------------------------------
# PE buffer construction (glue, plain JAX) -- mirrors the torch __init__
# ----------------------------------------------------------------------------
def make_pe(pos_len: int, d_model: int, dtype=jnp.float32) -> jnp.ndarray:
    """Returns pe of shape (d_model, pos_len), matching torch's
    pe.unsqueeze(0).transpose(1, 2) with the leading batch dim dropped."""
    pos = jnp.arange(pos_len, dtype=jnp.float32)[:, None]                  # (L, 1)
    div_term = jnp.exp(jnp.arange(0, d_model, 2, dtype=jnp.float32)
                       * (-np.log(10000.0) / d_model))                      # (ceil(D/2),)
    pe = jnp.zeros((pos_len, d_model), dtype=jnp.float32)
    pe = pe.at[:, 0::2].set(0.1 * jnp.sin(pos * div_term))
    # guard for odd d_model: odd columns only have floor(D/2) slots
    pe = pe.at[:, 1::2].set(0.1 * jnp.cos(pos * div_term[: d_model // 2]))
    return pe.T.astype(dtype)                                               # (D, L)


# ----------------------------------------------------------------------------
# PE expansion / layout prep (hoisted out of the hot path; precomputable)
# ----------------------------------------------------------------------------
def expand_pe(pe: jnp.ndarray, x_shape, pe_type: str, dtype) -> jnp.ndarray:
    """Expand (C, pos_len) PE to a (C, L) slab aligned with x flattened to
    (N, C, L).  L = T*F for 4-D inputs, L = T for 3-D inputs."""
    C = x_shape[1]
    if pe.shape[0] != C:
        raise ValueError(f"d_model mismatch: pe has {pe.shape[0]}, x has {C}")

    if len(x_shape) == 4:
        _, _, T, F = x_shape
        if pe_type == 't':
            if T > pe.shape[1]:
                raise ValueError(f"time extent {T} exceeds PE table {pe.shape[1]}")
            pe_e = jnp.broadcast_to(pe[:, :T, None], (C, T, F))
        elif pe_type == 'f':
            if F > pe.shape[1]:
                raise ValueError(f"freq extent {F} exceeds PE table {pe.shape[1]}")
            pe_e = jnp.broadcast_to(pe[:, None, :F], (C, T, F))
        else:
            raise ValueError(f"unknown pe_type: {pe_type!r}")
        return pe_e.reshape(C, T * F).astype(dtype)

    if len(x_shape) == 3:
        T = x_shape[2]
        if T > pe.shape[1]:
            raise ValueError(f"time extent {T} exceeds PE table {pe.shape[1]}")
        return pe[:, :T].astype(dtype)

    raise ValueError("x must be 3-D or 4-D")


# ----------------------------------------------------------------------------
# Pallas kernel: lane-aligned broadcast add (broadcast only over batch dim)
# ----------------------------------------------------------------------------
def _pe_add_kernel(x_ref, pe_ref, o_ref):
    # x_ref/o_ref: (1, C, Lt); pe_ref: (C, Lt).  Leading size-1 broadcast only
    # -> pure VPU add, no cross-lane/sublane movement.
    o_ref[...] = x_ref[...] + pe_ref[...][None, :, :]


def _choose_l_tile(L: int, C: int, itemsize: int, target_bytes: int = 4 << 20) -> int:
    """Largest lane-dense (multiple-of-128) tile of L that divides L and keeps
    a (C, Lt) block around `target_bytes` (~4 MiB: safe on v7x's 64 MiB VMEM
    with double buffering, still large enough to sit near the HBM roofline)."""
    if L % 128 != 0:
        # Fall back to the full extent (BlockSpec allows full-dim blocks).
        return L
    per_lane_bytes = C * itemsize
    max_lt = max(128, (target_bytes // per_lane_bytes) // 128 * 128)
    lt = min(L, int(max_lt))
    while L % lt != 0:
        lt -= 128
    return lt


def _pe_add_flat(x_flat: jnp.ndarray, pe_flat: jnp.ndarray) -> jnp.ndarray:
    """x_flat: (N, C, L); pe_flat: (C, L) already in x's dtype."""
    N, C, L = x_flat.shape
    itemsize = jnp.dtype(x_flat.dtype).itemsize
    lt = _choose_l_tile(L, C, itemsize)
    grid = (N, L // lt)

    block_bytes = C * lt * itemsize
    # 2x double-buffered x + 2x pe + 2x out blocks, plus slack; capped for v7x.
    vmem_limit = int(min(48 << 20, max(16 << 20, 6 * block_bytes + (2 << 20))))

    return pl.pallas_call(
        _pe_add_kernel,
        out_shape=jax.ShapeDtypeStruct(x_flat.shape, x_flat.dtype),
        grid=grid,
        in_specs=[
            pl.BlockSpec((1, C, lt), lambda b, l: (b, 0, l)),
            pl.BlockSpec((C, lt), lambda b, l: (0, l)),
        ],
        out_specs=pl.BlockSpec((1, C, lt), lambda b, l: (b, 0, l)),
        compiler_params=pltpu.CompilerParams(
            dimension_semantics=("parallel", "parallel"),
            vmem_limit_bytes=vmem_limit,
        ),
    )(x_flat, pe_flat)


# ----------------------------------------------------------------------------
# Wrapper: matches PositionalEncoding.forward semantics (dropout p = 0.0)
# ----------------------------------------------------------------------------
def positional_encoding_forward(x, pe, pe_type: str = 't', dropout: float = 0.0,
                                pe_expanded=None):
    """x: (N, C, T, F) or (N, C, T); pe: (C, pos_len) with C == d_model.
    Pass `pe_expanded` (from expand_pe) to skip per-call PE prep entirely."""
    # TODO(synk): dropout > 0.0 not implemented (module default p=0.0 => identity).
    assert dropout == 0.0

    if pe_expanded is None:
        pe_expanded = expand_pe(pe, x.shape, pe_type, x.dtype)

    if x.ndim == 4:
        N, C, T, F = x.shape
        # Flatten (T, F) -> T*F: contiguous merge, free (bitcast) in XLA;
        # gives the kernel a lane-dense last dim.
        out = _pe_add_flat(x.reshape(N, C, T * F), pe_expanded)
        return out.reshape(N, C, T, F)

    if x.ndim == 3:
        return _pe_add_flat(x, pe_expanded)

    raise ValueError("x must be 3-D or 4-D")


# ----------------------------------------------------------------------------
# Pure-JAX reference (for correctness check)
# ----------------------------------------------------------------------------
def positional_encoding_ref(x, pe, pe_type='t'):
    if x.ndim == 4:
        if pe_type == 't':
            return x + pe[None, :, :x.shape[2], None]
        return x + pe[None, :, None, :x.shape[3]]
    return x + pe[None, :, :x.shape[2]]


if __name__ == "__main__":
    key = jax.random.PRNGKey(0)
    k1, k2 = jax.random.split(key)

    d_model = 32       # number of channels / feature maps
    pos_len = 16       # positional length (>= time / freq extent)
    N, T, F = 2, 16, 16

    pe = make_pe(pos_len, d_model)                       # (32, 16)

    # 4-D input, time-domain PE ('t')
    x4 = jax.random.normal(k1, (N, d_model, T, F), dtype=jnp.float32)
    out_t = positional_encoding_forward(x4, pe, pe_type='t')
    jax.block_until_ready(out_t)
    np.testing.assert_allclose(np.asarray(out_t),
                               np.asarray(positional_encoding_ref(x4, pe, 't')),
                               rtol=1e-6, atol=1e-6)

    # 4-D input, frequency-domain PE ('f'), with precomputed expanded PE
    pe_f_expanded = expand_pe(pe, x4.shape, 'f', x4.dtype)
    out_f = positional_encoding_forward(x4, pe, pe_type='f',
                                        pe_expanded=pe_f_expanded)
    jax.block_until_ready(out_f)
    np.testing.assert_allclose(np.asarray(out_f),
                               np.asarray(positional_encoding_ref(x4, pe, 'f')),
                               rtol=1e-6, atol=1e-6)

    # 3-D input
    x3 = jax.random.normal(k2, (N, d_model, T), dtype=jnp.float32)
    out3 = positional_encoding_forward(x3, pe, pe_type='t')
    jax.block_until_ready(out3)
    np.testing.assert_allclose(np.asarray(out3),
                               np.asarray(positional_encoding_ref(x3, pe, 't')),
                               rtol=1e-6, atol=1e-6)

    print("KERNEL_OK")
</pallas_src>

<mosaic_0001>
module attributes {stable_mosaic.version = 11 : i64} {
  func.func @_pe_add_kernel(%arg0: i32, %arg1: i32, %arg2: memref<1x32x256xf32, #tpu.memory_space<vmem>>, %arg3: memref<32x256xf32, #tpu.memory_space<vmem>>, %arg4: memref<1x32x256xf32, #tpu.memory_space<vmem>>) attributes {dimension_semantics = [#tpu.dimension_semantics<parallel>, #tpu.dimension_semantics<parallel>], iteration_bounds = array<i64: 2, 1>, scalar_prefetch = 0 : i64, scratch_operands = 0 : i64, tpu.core_type = #tpu.core_type<tc>, window_params = [{transform_indices = @transform_0, window_bounds = array<i64: 1, 32, 256>}, {transform_indices = @transform_1, window_bounds = array<i64: 32, 256>}, {transform_indices = @transform_2, window_bounds = array<i64: 1, 32, 256>}]} {
    %c0 = arith.constant 0 : index
    %c0_0 = arith.constant 0 : index
    %c0_1 = arith.constant 0 : index
    %0 = vector.load %arg2[%c0, %c0_0, %c0_1] : memref<1x32x256xf32, #tpu.memory_space<vmem>>, vector<1x32x256xf32>
    %c0_2 = arith.constant 0 : index
    %c0_3 = arith.constant 0 : index
    %1 = vector.load %arg3[%c0_2, %c0_3] : memref<32x256xf32, #tpu.memory_space<vmem>>, vector<32x256xf32>
    %2 = vector.shape_cast %1 : vector<32x256xf32> to vector<1x32x256xf32>
    %3 = arith.addf %0, %2 : vector<1x32x256xf32>
    %c0_4 = arith.constant 0 : index
    %c0_5 = arith.constant 0 : index
    %c0_6 = arith.constant 0 : index
    %4 = vector.load %arg4[%c0_4, %c0_5, %c0_6] : memref<1x32x256xf32, #tpu.memory_space<vmem>>, vector<1x32x256xf32>
    tpu.vector_store %arg4[%c0_4, %c0_5, %c0_6], %3 {strides = array<i32>} : memref<1x32x256xf32, #tpu.memory_space<vmem>>, vector<1x32x256xf32>,
    return
  }
  func.func @transform_0(%arg0: i32, %arg1: i32) -> (i32, i32, i32) {
    %c0_i32 = arith.constant 0 : i32
    %c0_i32_0 = arith.constant 0 : i32
    return %arg0, %c0_i32, %arg1 : i32, i32, i32
  }
  func.func @transform_1(%arg0: i32, %arg1: i32) -> (i32, i32) {
    %c0_i32 = arith.constant 0 : i32
    %c0_i32_0 = arith.constant 0 : i32
    return %c0_i32, %arg1 : i32, i32
  }
  func.func @transform_2(%arg0: i32, %arg1: i32) -> (i32, i32, i32) {
    %c0_i32 = arith.constant 0 : i32
    %c0_i32_0 = arith.constant 0 : i32
    return %arg0, %c0_i32, %arg1 : i32, i32, i32
  }
}

</mosaic_0001>

<bundles_post_ra>
// kernel: tpu_custom_call.1
= control target key start
LH: loop header
LB: loop body
LE: loop exit
PB: predicated region body
PF: predicated region fallthrough
CT: control target
= control target key end

     0   :  { %7 = vsyncpa [#allocation3], 0  ;;  %s852_s0 = inlined_call_operand.hbm [shape: f32[2,32,256], index: 0, kind: input, shape index: {}]   ;;  %s853_s1 = inlined_call_operand.hbm [shape: f32[32,256], index: 1, kind: input, shape index: {}]   ;;  %s854_s2 = inlined_call_operand.hbm [shape: f32[2,32,256], index: 2, kind: output, shape index: {}]  }
   0x1   :  { %9 = vsyncpa [#allocation3 + $0x1], 0 }
   0x2   :  { %10 = vsyncpa [#allocation6], 0 }
   0x3   :  { %11 = vsyncpa [#allocation4], 0 }
   0x4   :  { %13 = vsyncpa [#allocation4 + $0x1], 0  ;;  %s617_s9 = smov 0   ;;  %s619_s10 = smov 0  }
   0x5   :  { %s621_s11 = smov 0   ;;  %s623_s12 = smov 0  }
   0x6   :  { %s625_s13 = smov 0   ;;  %s627_s14 = smov 0  }
   0x7 LB: > { %s353_s15 = sadd.s32 4294967295, %s593_s14   ;;  %s354_s16 = sadd.s32 4294967294, %s593_s14   ;;  %s593_s14 = sphi %s627_s14, %s19_s14   ;;  %s589_s13 = sphi %s625_s13, %s878_s13   ;;  %s585_s12 = sphi %s623_s12, %s877_s12   ;;  %s581_s11 = sphi %s621_s11, %s876_s11   ;;  %s577_s10 = sphi %s619_s10, %s875_s10   ;;  %s573_s9 = sphi %s617_s9, %s874_s9  }
   0x8   : > { %p53_p0 = scmp.ne.s32.totalorder %s577_s10, %s573_s9  ;;  %p651_p1 = scmp.eq.s32.totalorder %s353_s15, 0 }
   0x9   : > { %p655_p2 = scmp.eq.s32.totalorder %s353_s15, 1  ;;  %p111_p3 = scmp.eq.s32.totalorder %s354_s16, 1 }
   0xa   : > { %s859_s17 = scalar_select %p651_p1, 1, 0 }
   0xb   : > { %s860_s18 = scalar_select %p655_p2, 1, 0 }
   0xc   : > { %p661_p4 = por %p651_p1, %p53_p0  ;;  %p355_p5 = scmp.ge.s32.totalorder %s593_s14, 1 }
   0xd   : > { %p666_p6 = por %p111_p3, %p53_p0  ;;  %p118_p7 = scmp.lt.s32.totalorder %s593_s14, 3 }
   0xe   : > { %s861_s19 = scalar_select %p661_p4, 1, 0 }
   0xf   : > { %s862_s20 = scalar_select %p666_p6, 1, 0 }
  0x10   : > { %p671_p8 = pnand %p355_p5, %p118_p7  ;;  %s595_s22 = smov [#allocation5]  }
  0x11   : > { %s133_s23 = sshll.u32 %s595_s22, 4  ;;  %s31_s25 = sadd.s32 1, %s589_s13  ;;  %s134_s23 = int_to_ptr.vmem [resolvable:$true] %s133_s23 }
  0x12   : > { %s863_s21 = scalar_select %p671_p8, 1, 0 }
  0x13   : > { %p380_p9 = pneg %p671_p8  ;;  %s449_s28 = scalar_lea.hbm %s853_s1, 1024 }
  0x14   : > { %p450_p12 = scmp.ne.s32.totalorder %s853_s1, %s449_s28  ;;  %p456_p5 = scmp.lt.u32.totalorder %s449_s28, %s853_s1 }
  0x15   : > { %p680_p11 = pnand %p380_p9, %p651_p1 }
  0x17   : > { %p451_p13 = pneg %p680_p11 }
  0x19   : > { %p452_p0 = pnand %p451_p13, %p450_p12 }
  0x1b   : > { %p453_p3 = pneg %p452_p0 }
  0x1d   : > { %p458_p7 = pnand %p456_p5, %p453_p3 }
  0x1f   : > { %461 = shalt.err (!%p458_p7)
}
  0x20   : > { %s462_s5 = scalar_lea.vmem %s134_s23, 1024  ;;  %p470_p1 = scmp.lt.s32.totalorder %s134_s23, %s134_s23 }
  0x21   : > { %p463_p9 = scmp.ne.s32.totalorder %s134_s23, %s462_s5  ;;  %p471_p4 = scmp.lt.s32.totalorder %s462_s5, %s462_s5 }
  0x23   : > { %p465_p10 = pnand %p463_p9, %p451_p13  ;;  %p472_p8 = por %p471_p4, %p470_p1 }
  0x25   : > { %p466_p6 = pneg %p465_p10 }
  0x27   : > { %p473_p2 = pnand %p472_p8, %p466_p6 }
  0x29   : > { %476 = shalt.err (!%p473_p2)
}
  0x2a   : > { %s596_s6 = smov 256   ;;  %s597_s7 = smov 16  }
  0x2b   : > { %383 = dma.hbm_to_vmem [thread:$0]  (!%p680_p11), %s853_s1, 1024, %s134_s23, [#allocation6], %s596_s6, %s596_s6, %s597_s7  }
  0x2c   : > { %p33_p1 = scmp.ge.s32.totalorder %s31_s25, 2  ;;  %s40_s16 = sadd.s32 1, %s581_s11 }
  0x2d   : > { %p47_p2 = scmp.ne.s32.totalorder %s581_s11, %s577_s10  ;;  %p48_p4 = scmp.eq.s32.totalorder %s593_s14, 0 }
  0x2e   : > { %s880_s25 = smov (%p33_p1, %s31_s25), 0  ;;  %p866_p8 = scmp.ne.s32.totalorder %s860_s18, 0 }
  0x2f   : > { %p710_p6 = por %p48_p4, %p47_p2  ;;  %s35_s26 = ssub.s32 %s589_s13, %s880_s25 }
  0x30   : > { %p716_p10 = por %p866_p8, %p47_p2  ;;  %p393_p12 = scmp.lt.s32.totalorder %s593_s14, 2 }
  0x31   : > { %p38_p11 = scmp.eq.s32.totalorder %s35_s26, 0  ;;  %s147_s23 = sand.u32 1, %s581_s11  }
  0x32   : > { %s358_s27 = sshll.u32 %s147_s23, 6  ;;  %s370_s29 = sshll.u32 %s589_s13, 10 }
  0x33   : > { %s725_s28 = scalar_select %p38_p11, %s581_s11, %s40_s16  }
  0x34   : > { %s731_s4 = scalar_lea.hbm %s852_s0, %s370_s29  ;;  %s151_s18 = scalar_lea.vmem [#allocation2], %s358_s27 }
  0x35   : > { %s160_s5 = sshll.u32 %s151_s18, 4  ;;  %p737_p13 = pnand %p393_p12, %p710_p6  ;;  %s733_s5 = int_to_ptr.vmem [resolvable:$true] %s160_s5 }
  0x36   : > { %s741_s15 = scalar_lea.sflag [#allocation3], %s147_s23  ;;  %s477_s16 = scalar_lea.hbm %s731_s4, 1024 }
  0x37   : > { %p478_p0 = scmp.ne.s32.totalorder %s731_s4, %s477_s16  ;;  %p479_p3 = pneg %p737_p13 }
  0x38   : > { %s482_s22 = scalar_lea.hbm %s852_s0, 2048  ;;  %p483_p9 = scmp.lt.u32.totalorder %s731_s4, %s852_s0 }
  0x39   : > { %p480_p5 = pnand %p479_p3, %p478_p0  ;;  %p484_p1 = scmp.lt.u32.totalorder %s482_s22, %s477_s16 }
  0x3a   : > { %p486_p4 = scmp.lt.u32.totalorder %s477_s16, %s731_s4 }
  0x3b   : > { %p481_p7 = pneg %p480_p5  ;;  %p485_p2 = por %p484_p1, %p483_p9 }
  0x3d   : > { %p487_p6 = por %p486_p4, %p485_p2 }
  0x3f   : > { %p488_p8 = pnand %p487_p6, %p481_p7 }
  0x41   : > { %491 = shalt.err (!%p488_p8)
}
  0x42   : > { %s492_s23 = scalar_lea.vmem %s733_s5, 1024  ;;  %s598_s3 = smov [#allocation2]  }
  0x43   : > { %p493_p12 = scmp.ne.s32.totalorder %s733_s5, %s492_s23  ;;  %s497_s18 = sshll.u32 %s598_s3, 4  ;;  %s498_s18 = int_to_ptr.vmem [resolvable:$false] %s497_s18 }
  0x44   : > { %s499_s26 = scalar_lea.vmem %s498_s18, 2048  ;;  %p500_p5 = scmp.lt.s32.totalorder %s733_s5, %s498_s18 }
  0x45   : > { %p495_p11 = pnand %p493_p12, %p479_p3  ;;  %p501_p9 = scmp.lt.s32.totalorder %s499_s26, %s492_s23 }
  0x47   : > { %p496_p0 = pneg %p495_p11  ;;  %p502_p1 = por %p501_p9, %p500_p5 }
  0x49   : > { %p503_p2 = pnand %p502_p1, %p496_p0 }
  0x4b   : > { %506 = shalt.err (!%p503_p2)
}
  0x4c   : > { %387 = dma.hbm_to_vmem [thread:$0]  (!%p737_p13), %s731_s4, 1024, %s733_s5, %s741_s15, %s596_s6, %s596_s6, %s597_s7  }
  0x4d   : > { %p869_p3 = scmp.ne.s32.totalorder %s863_s21, 0 }
  0x4e   : > { %s775_s16 = sand.u32 (!%p869_p3), 1, %s577_s10   ;;  %p870_p7 = scmp.ne.s32.totalorder (!%p869_p3), %s861_s19, 0 }
  0x4f   : > { %172 = sbr.rel (%p869_p3) target bundleno = 116 (0x74), region = 28  ;;  %s362_s27 = sshll.u32 (!%p869_p3), %s775_s16, 6 }
  0x50   : > { %s175_s22 = scalar_lea.sflag (!%p869_p3), [#allocation3], %s775_s16  ;;  %s779_s29 = scalar_lea.vmem (!%p869_p3), [#allocation2], %s362_s27 }
  0x56   : > { %560 = dma.done.wait (%p870_p7), %s175_s22, 1024  }
  0x57   : > { %562 = vsyncadd (%p870_p7), %s175_s22, 4294966272  ;;  %p871_p13 = scmp.ne.s32.totalorder %s859_s17, 0 }
  0x59   : > { %564 = dma.done.wait (%p871_p13), [#allocation6], 1024  }
  0x5a   : > { %566 = vsyncadd (%p871_p13), [#allocation6], 4294966272  ;;  %v206_v0 = vld [vmem:[%s779_s29] sm:$0xff]  ;;  %v207_v2 = vld [vmem:[%s779_s29 + $0x8] sm:$0xff]  ;;  %s202_s19 = scalar_lea.vmem [#allocation7], %s362_s27  ;;  %s371_s17 = sshll.u32 %s585_s12, 10 }
  0x5b   : > { %v214_v1 = vld [vmem:[#allocation5] sm:$0xff]  ;;  %v215_v4 = vld [vmem:[#allocation5 + $0x8] sm:$0xff]  ;;  %v208_v5 = vld [vmem:[%s779_s29 + $0x10] sm:$0xff]  ;;  %s254_s21 = sshll.u32 %s202_s19, 4  ;;  %s803_s7 = scalar_lea.hbm %s854_s2, %s371_s17  ;;  %s798_s21 = int_to_ptr.vmem [resolvable:$true] %s254_s21 }
  0x5c   : > { %v222_v3 = vadd.f32 %v214_v1, %v206_v0  ;;  %v216_v6 = vld [vmem:[#allocation5 + $0x10] sm:$0xff]  ;;  %v223_v7 = vadd.f32 %v215_v4, %v207_v2  ;;  %v209_v9 = vld [vmem:[%s779_s29 + $0x18] sm:$0xff]  ;;  %v210_v11 = vld [vmem:[%s779_s29 + $0x20] sm:$0xff]  ;;  %s239_s4 = scalar_lea.sflag [#allocation4], %s775_s16  ;;  %s507_s5 = scalar_lea.vmem %s798_s21, 1024 }
  0x5d   : > { %v224_v8 = vadd.f32 %v216_v6, %v208_v5  ;;  %v217_v10 = vld [vmem:[#allocation5 + $0x18] sm:$0xff]  ;;  %v218_v13 = vld [vmem:[#allocation5 + $0x20] sm:$0xff]  ;;  %v211_v14 = vld [vmem:[%s779_s29 + $0x28] sm:$0xff]  ;;  %p508_p4 = scmp.ne.s32.totalorder %s798_s21, %s507_s5  ;;  %s599_s8 = smov [#allocation7]  }
  0x5e   : > { %230 = vst [vmem:[%s202_s19] sm:$0xff] %v222_v3  ;;  %v225_v12 = vadd.f32 %v217_v10, %v209_v9  ;;  %v219_v15 = vld [vmem:[#allocation5 + $0x28] sm:$0xff]  ;;  %231 = vst [vmem:[%s202_s19 + $0x8] sm:$0xff] %v223_v7  ;;  %v226_v16 = vadd.f32 %v218_v13, %v210_v11  ;;  %v212_v18 = vld [vmem:[%s779_s29 + $0x30] sm:$0xff]  ;;  %s511_s15 = sshll.u32 %s599_s8, 4  ;;  %s512_s15 = int_to_ptr.vmem [resolvable:$false] %s511_s15 }
  0x5f   : > { %232 = vst [vmem:[%s202_s19 + $0x10] sm:$0xff] %v224_v8  ;;  %v227_v17 = vadd.f32 %v219_v15, %v211_v14  ;;  %v220_v19 = vld [vmem:[#allocation5 + $0x30] sm:$0xff]  ;;  %v213_v20 = vld [vmem:[%s779_s29 + $0x38] sm:$0xff]  ;;  %p509_p6 = pnand %p508_p4, %p716_p10  ;;  %s513_s30 = scalar_lea.vmem %s512_s15, 2048 }
  0x60   : > { %233 = vst [vmem:[%s202_s19 + $0x18] sm:$0xff] %v225_v12  ;;  %v228_v21 = vadd.f32 %v220_v19, %v212_v18  ;;  %v221_v22 = vld [vmem:[#allocation5 + $0x38] sm:$0xff]  ;;  %234 = vst [vmem:[%s202_s19 + $0x20] sm:$0xff] %v226_v16  ;;  %p514_p12 = scmp.lt.s32.totalorder %s798_s21, %s512_s15  ;;  %p515_p11 = scmp.lt.s32.totalorder %s513_s30, %s507_s5 }
  0x61   : > { %235 = vst [vmem:[%s202_s19 + $0x28] sm:$0xff] %v227_v17  ;;  %v229_v23 = vadd.f32 %v221_v22, %v213_v20  ;;  %p510_p8 = pneg %p509_p6 }
  0x62   : > { %236 = vst [vmem:[%s202_s19 + $0x30] sm:$0xff] %v228_v21  ;;  %p516_p0 = por %p515_p11, %p514_p12 }
  0x63   : > { %237 = vst [vmem:[%s202_s19 + $0x38] sm:$0xff] %v229_v23 }
  0x64   : > { %p517_p5 = pnand %p516_p0, %p510_p8 }
  0x66   : > { %520 = shalt.err (!%p517_p5)
}
  0x67   : > { %s521_s23 = scalar_lea.hbm %s803_s7, 1024  ;;  %s525_s26 = scalar_lea.hbm %s854_s2, 2048 }
  0x68   : > { %p522_p9 = scmp.ne.s32.totalorder %s803_s7, %s521_s23  ;;  %p526_p3 = scmp.lt.u32.totalorder %s803_s7, %s854_s2 }
  0x69   : > { %p527_p7 = scmp.lt.u32.totalorder %s525_s26, %s521_s23  ;;  %p529_p4 = scmp.lt.u32.totalorder %s521_s23, %s803_s7 }
  0x6a   : > { %p523_p1 = pnand %p522_p9, %p716_p10 }
  0x6b   : > { %p528_p13 = por %p527_p7, %p526_p3 }
  0x6c   : > { %p524_p2 = pneg %p523_p1 }
  0x6d   : > { %p530_p6 = por %p529_p4, %p528_p13 }
  0x6f   : > { %p531_p8 = pnand %p530_p6, %p524_p2 }
  0x71   : > { %534 = shalt.err (!%p531_p8)
}
  0x72   : > { %s600_s29 = smov 256   ;;  %s601_s19 = smov 16  }
  0x73   : > { %378 = dma.vmem_to_hbm [thread:$0]  (%p716_p10), %s798_s21, 1024, %s803_s7, %s239_s4, %s600_s29, %s600_s29, %s601_s19  }
  0x74 PF: > { %s269_s17 = sand.u32 1, %s573_s9   ;;  %p872_p12 = scmp.ne.s32.totalorder %s862_s20, 0 }
  0x75   : > { %p873_p11 = scmp.ge.s32.totalorder %s593_s14, 2  ;;  %s270_s12 = scalar_lea.sflag [#allocation4], %s269_s17 }
  0x77   : > { %p389_p0 = pnand %p873_p11, %p872_p12 }
  0x79   : > { %568 = dma.done.wait (!%p389_p0), %s270_s12, 1024  }
  0x7a   : > { %570 = vsyncadd (!%p389_p0), %s270_s12, 4294966272  ;;  %s19_s14 = sadd.s32 1, %s593_s14   ;;  %s874_s9 = smov %s577_s10 }
  0x7b   : > { %p16_p5 = scmp.ge.s32.totalorder %s19_s14, 4   ;;  %s875_s10 = smov %s581_s11 }
  0x7c   : > { %s876_s11 = smov %s725_s28  ;;  %s877_s12 = smov %s589_s13 }
  0x7d   : > { %s878_s13 = smov %s880_s25  ;;  %18 = sbr.rel (!%p16_p5) target bundleno = 7 (0x7), region = 78 }
  0x84   :  { %275 = vsyncpa [#allocation3], 1 }
  0x85   :  { %277 = vsyncpa [#allocation3 + $0x1], 1 }
  0x86   :  { %278 = vsyncpa [#allocation6], 1 }
  0x87   :  { %279 = vsyncpa [#allocation4], 1 }
  0x88   :  { %281 = vsyncpa [#allocation4 + $0x1], 1 }

</bundles_post_ra>
